<compile_context>
chip_gen: v7x
topology: tpu7x:2x2x1
jax: 0.10.0
libtpu: 0.0.40
codegen_flags: <defaults>
</compile_context>

<pallas_src>
import functools

import jax
import jax.numpy as jnp
from jax import lax
from jax.experimental import pallas as pl
from jax.experimental.pallas import tpu as pltpu

_LANES = 128
_MAX_TILE_ROWS = 2048  # 2048x128 f32 = 1 MiB per input block
_NEG_BIG = float(jnp.finfo(jnp.float32).min)  # large FINITE sentinel (NOT -inf)


def _round_up(x: int, mult: int) -> int:
    return ((x + mult - 1) // mult) * mult


def _sublane_quantum(dtype) -> int:
    # Native sublane packing: 8 rows for 4-byte, 16 for 2-byte, 32 for 1-byte.
    return max(8, 32 // jnp.dtype(dtype).itemsize)


def _circle_loss_kernel(sp_ref, sn_ref, out_ref,
                        m_p, s_p, m_n, s_n,
                        *, m: float, gamma: float,
                        n_pos: int, n_neg: int,
                        tile_rows_p: int, tile_rows_n: int,
                        tiles_p: int, tiles_n: int):
    i = pl.program_id(0)

    @pl.when(i == 0)
    def _init():
        m_p[...] = jnp.full_like(m_p, _NEG_BIG)
        m_n[...] = jnp.full_like(m_n, _NEG_BIG)
        s_p[...] = jnp.zeros_like(s_p)
        s_n[...] = jnp.zeros_like(s_n)

    def logit_p_fn(v):
        # ap = clamp_min(1 + m - sp, 0); detach only matters for backward.
        ap = jnp.maximum((1.0 + m) - v, 0.0)
        return ap * ((1.0 - m) - v) * gamma  # == -ap * (v - (1 - m)) * gamma

    def logit_n_fn(v):
        an = jnp.maximum(v + m, 0.0)
        return an * (v - m) * gamma

    def update(logit, m_ref, s_ref, valid=None):
        # Per-element online logsumexp with exactly one exp per element.
        m_old = m_ref[...]
        s_old = s_ref[...]
        d = logit - m_old
        e = jnp.exp(-jnp.abs(d))  # exp(logit - m_new) or exp(m_old - m_new)
        e_keep = e if valid is None else jnp.where(valid, e, 0.0)
        # d > 0 only on valid elements (masked logit == _NEG_BIG <= m_old).
        s_ref[...] = jnp.where(d > 0.0, s_old * e + 1.0, s_old + e_keep)
        m_ref[...] = jnp.maximum(m_old, logit)

    def process(x_ref, logit_fn, m_ref, s_ref, n_valid, tile_rows, n_tiles):
        tile_elems = tile_rows * _LANES
        has_partial = (n_valid % tile_elems != 0) or (n_valid == 0)
        n_full = n_tiles - 1 if has_partial else n_tiles

        if n_full > 0:
            @pl.when(i < n_full)
            def _interior():  # fully-valid tile: no iota, no mask, no selects
                update(logit_fn(x_ref[...].astype(jnp.float32)), m_ref, s_ref)

        if has_partial:
            @pl.when(i == n_tiles - 1)
            def _boundary():  # single tail tile: mask padding to _NEG_BIG
                x = x_ref[...].astype(jnp.float32)
                row = lax.broadcasted_iota(jnp.int32, (tile_rows, _LANES), 0)
                lane = lax.broadcasted_iota(jnp.int32, (tile_rows, _LANES), 1)
                flat = ((n_tiles - 1) * tile_rows + row) * _LANES + lane
                valid = flat < n_valid
                update(jnp.where(valid, logit_fn(x), _NEG_BIG),
                       m_ref, s_ref, valid=valid)

    # Steps past a set's tile count are skipped entirely (and its clamped
    # index_map keeps re-presenting the same block, so no re-DMA either).
    process(sp_ref, logit_p_fn, m_p, s_p, n_pos, tile_rows_p, tiles_p)
    process(sn_ref, logit_n_fn, m_n, s_n, n_neg, tile_rows_n, tiles_n)

    @pl.when(i == pl.num_programs(0) - 1)
    def _finalize():
        def lse(m_ref, s_ref):
            mv, sv = m_ref[...], s_ref[...]
            mm = jnp.max(mv, keepdims=True)                       # (1, 1)
            tot = jnp.sum(sv * jnp.exp(mv - mm), keepdims=True)   # (1, 1)
            return mm + jnp.log(tot)

        z = lse(m_p, s_p) + lse(m_n, s_n)
        # stable softplus: max(z, 0) + log1p(exp(-|z|))
        loss = jnp.maximum(z, 0.0) + jnp.log1p(jnp.exp(-jnp.abs(z)))
        out_ref[...] = loss.astype(out_ref.dtype)


def circle_loss(sp: jax.Array, sn: jax.Array, m: float, gamma: float,
                *, max_tile_rows: int = _MAX_TILE_ROWS) -> jax.Array:
    """Pallas implementation of CircleLoss.forward. sp: (Np,), sn: (Nn,) -> scalar."""
    assert sp.ndim == 1 and sn.ndim == 1
    n_pos, n_neg = int(sp.shape[0]), int(sn.shape[0])

    def prep(x):
        n = int(x.shape[0])
        quantum = _sublane_quantum(x.dtype)
        cap = _round_up(max(int(max_tile_rows), 1), quantum)
        rows = max(1, pl.cdiv(n, _LANES))
        blk_rows = min(cap, _round_up(rows, quantum))
        # Only inputs smaller than one block grow past `rows`; large inputs
        # get at most a <=127-element lane-tail pad (or none at all).
        rows_padded = max(rows, blk_rows)
        pad = rows_padded * _LANES - n
        if pad:
            x = jnp.pad(x, (0, pad))
        x2 = x.reshape(rows_padded, _LANES)   # free reshape (contiguous)
        n_tiles = pl.cdiv(rows_padded, blk_rows)
        return x2, blk_rows, n_tiles

    sp2, br_p, tiles_p = prep(sp)
    sn2, br_n, tiles_n = prep(sn)
    num_tiles = max(tiles_p, tiles_n)

    kernel = functools.partial(
        _circle_loss_kernel, m=float(m), gamma=float(gamma),
        n_pos=n_pos, n_neg=n_neg,
        tile_rows_p=br_p, tile_rows_n=br_n,
        tiles_p=tiles_p, tiles_n=tiles_n)

    out = pl.pallas_call(
        kernel,
        out_shape=jax.ShapeDtypeStruct((1, 1), jnp.float32),
        grid_spec=pltpu.PrefetchScalarGridSpec(
            num_scalar_prefetch=0,
            grid=(num_tiles,),
            in_specs=[
                # Clamp the block index so the shorter set re-presents its
                # last tile on extra steps (no re-DMA, compute skipped).
                pl.BlockSpec((br_p, _LANES),
                             lambda i: (jnp.minimum(i, tiles_p - 1), 0)),
                pl.BlockSpec((br_n, _LANES),
                             lambda i: (jnp.minimum(i, tiles_n - 1), 0)),
            ],
            out_specs=pl.BlockSpec((1, 1), lambda i: (0, 0)),
            scratch_shapes=[
                pltpu.VMEM((br_p, _LANES), jnp.float32),  # m_p
                pltpu.VMEM((br_p, _LANES), jnp.float32),  # s_p
                pltpu.VMEM((br_n, _LANES), jnp.float32),  # m_n
                pltpu.VMEM((br_n, _LANES), jnp.float32),  # s_n
            ],
        ),
        compiler_params=pltpu.CompilerParams(
            dimension_semantics=("arbitrary",)),
    )(sp2, sn2)
    return out[0, 0]


def circle_loss_ref(sp, sn, m, gamma):
    """Pure-JAX reference mirroring the PyTorch module (for sanity checking)."""
    sp = sp.astype(jnp.float32)
    sn = sn.astype(jnp.float32)
    ap = jnp.maximum(-sp + 1.0 + m, 0.0)
    an = jnp.maximum(sn + m, 0.0)
    logit_p = -ap * (sp - (1.0 - m)) * gamma
    logit_n = an * (sn - m) * gamma
    z = jax.scipy.special.logsumexp(logit_n) + jax.scipy.special.logsumexp(logit_p)
    return jax.nn.softplus(z)


if __name__ == "__main__":
    m, gamma = 0.25, 80.0
    key = jax.random.PRNGKey(0)
    k1, k2, k3, k4, k5, k6 = jax.random.split(key, 6)

    # Test 1: tiny f32 inputs (single masked boundary tile each).
    sp = jax.random.uniform(k1, (8,), jnp.float32, -1.0, 1.0)
    sn = jax.random.uniform(k2, (16,), jnp.float32, -1.0, 1.0)
    loss = circle_loss(sp, sn, m, gamma)
    jax.block_until_ready(loss)
    ref = circle_loss_ref(sp, sn, m, gamma)
    assert jnp.allclose(loss, ref, rtol=1e-4, atol=1e-4), (loss, ref)

    # Test 2: bf16, uneven sizes, multi-step grid with a small forced block
    # (exercises 16-row bf16 sublane quantum, partial edge-block DMA,
    # clamped index map and skipped fully-masked steps).
    sp_b = jax.random.uniform(k3, (1100,), jnp.float32, -1.0, 1.0).astype(jnp.bfloat16)
    sn_b = jax.random.uniform(k4, (2500,), jnp.float32, -1.0, 1.0).astype(jnp.bfloat16)
    loss_b = circle_loss(sp_b, sn_b, m, gamma, max_tile_rows=8)
    jax.block_until_ready(loss_b)
    ref_b = circle_loss_ref(sp_b, sn_b, m, gamma)
    assert jnp.allclose(loss_b, ref_b, rtol=1e-3, atol=1e-3), (loss_b, ref_b)

    # Test 3: f32 multi-step grid; sp is an exact block multiple (pure
    # unmasked interior fast path, zero host-side padding), sn has a
    # boundary tile; sp's compute is skipped on later steps.
    sp_c = jax.random.uniform(k5, (2048,), jnp.float32, -1.0, 1.0)
    sn_c = jax.random.uniform(k6, (5000,), jnp.float32, -1.0, 1.0)
    loss_c = circle_loss(sp_c, sn_c, m, gamma, max_tile_rows=8)
    jax.block_until_ready(loss_c)
    ref_c = circle_loss_ref(sp_c, sn_c, m, gamma)
    assert jnp.allclose(loss_c, ref_c, rtol=1e-4, atol=1e-4), (loss_c, ref_c)

    # Test 4: same inputs through the default (large-block, single-step) path.
    loss_d = circle_loss(sp_c, sn_c, m, gamma)
    jax.block_until_ready(loss_d)
    assert jnp.allclose(loss_d, ref_c, rtol=1e-4, atol=1e-4), (loss_d, ref_c)

    print("KERNEL_OK")
</pallas_src>

<mosaic_0001>
module attributes {stable_mosaic.version = 11 : i64} {
  func.func @_circle_loss_kernel(%arg0: i32, %arg1: memref<8x128xf32, #tpu.memory_space<vmem>>, %arg2: memref<8x128xf32, #tpu.memory_space<vmem>>, %arg3: memref<1x1xf32, #tpu.memory_space<vmem>>, %arg4: memref<8x128xf32, #tpu.memory_space<vmem>>, %arg5: memref<8x128xf32, #tpu.memory_space<vmem>>, %arg6: memref<8x128xf32, #tpu.memory_space<vmem>>, %arg7: memref<8x128xf32, #tpu.memory_space<vmem>>) attributes {dimension_semantics = [#tpu.dimension_semantics<arbitrary>], iteration_bounds = array<i64: 1>, scalar_prefetch = 0 : i64, scratch_operands = 4 : i64, tpu.core_type = #tpu.core_type<tc>, window_params = [{transform_indices = @transform_0, window_bounds = array<i64: 8, 128>}, {transform_indices = @transform_1, window_bounds = array<i64: 8, 128>}, {pipeline_mode = #tpu.pipeline_mode<synchronous>, transform_indices = @transform_2, window_bounds = array<i64: 1, 1>}]} {
    %c0_i32 = arith.constant 0 : i32
    %0 = arith.cmpi eq, %arg0, %c0_i32 : i32
    %1 = arith.extui %0 : i1 to i32
    %c0_i32_0 = arith.constant 0 : i32
    %2 = arith.cmpi ne, %1, %c0_i32_0 : i32
    scf.if %2 {
      %cst = arith.constant -3.40282347E+38 : f32
      %12 = vector.broadcast %cst : f32 to vector<8x128xf32>
      %c0 = arith.constant 0 : index
      %c0_7 = arith.constant 0 : index
      %13 = vector.load %arg4[%c0, %c0_7] : memref<8x128xf32, #tpu.memory_space<vmem>>, vector<8x128xf32>
      tpu.vector_store %arg4[%c0, %c0_7], %12 {strides = array<i32>} : memref<8x128xf32, #tpu.memory_space<vmem>>, vector<8x128xf32>,
      %cst_8 = arith.constant -3.40282347E+38 : f32
      %14 = vector.broadcast %cst_8 : f32 to vector<8x128xf32>
      %c0_9 = arith.constant 0 : index
      %c0_10 = arith.constant 0 : index
      %15 = vector.load %arg6[%c0_9, %c0_10] : memref<8x128xf32, #tpu.memory_space<vmem>>, vector<8x128xf32>
      tpu.vector_store %arg6[%c0_9, %c0_10], %14 {strides = array<i32>} : memref<8x128xf32, #tpu.memory_space<vmem>>, vector<8x128xf32>,
      %cst_11 = arith.constant 0.000000e+00 : f32
      %16 = vector.broadcast %cst_11 : f32 to vector<8x128xf32>
      %c0_12 = arith.constant 0 : index
      %c0_13 = arith.constant 0 : index
      %17 = vector.load %arg5[%c0_12, %c0_13] : memref<8x128xf32, #tpu.memory_space<vmem>>, vector<8x128xf32>
      tpu.vector_store %arg5[%c0_12, %c0_13], %16 {strides = array<i32>} : memref<8x128xf32, #tpu.memory_space<vmem>>, vector<8x128xf32>,
      %cst_14 = arith.constant 0.000000e+00 : f32
      %18 = vector.broadcast %cst_14 : f32 to vector<8x128xf32>
      %c0_15 = arith.constant 0 : index
      %c0_16 = arith.constant 0 : index
      %19 = vector.load %arg7[%c0_15, %c0_16] : memref<8x128xf32, #tpu.memory_space<vmem>>, vector<8x128xf32>
      tpu.vector_store %arg7[%c0_15, %c0_16], %18 {strides = array<i32>} : memref<8x128xf32, #tpu.memory_space<vmem>>, vector<8x128xf32>,
    } else {
    }
    %c0_i32_1 = arith.constant 0 : i32
    %3 = arith.cmpi eq, %arg0, %c0_i32_1 : i32
    %4 = arith.extui %3 : i1 to i32
    %c0_i32_2 = arith.constant 0 : i32
    %5 = arith.cmpi ne, %4, %c0_i32_2 : i32
    scf.if %5 {
      %c0 = arith.constant 0 : index
      %c0_7 = arith.constant 0 : index
      %12 = vector.load %arg1[%c0, %c0_7] : memref<8x128xf32, #tpu.memory_space<vmem>>, vector<8x128xf32>
      %13 = tpu.iota {dimensions = array<i32: 0>} : vector<8x128xi32>
      %14 = tpu.iota {dimensions = array<i32: 1>} : vector<8x128xi32>
      %c0_i32_8 = arith.constant 0 : i32
      %15 = vector.broadcast %c0_i32_8 : i32 to vector<8x128xi32>
      %16 = arith.addi %15, %13 : vector<8x128xi32>
      %c128_i32 = arith.constant 128 : i32
      %17 = vector.broadcast %c128_i32 : i32 to vector<8x128xi32>
      %18 = arith.muli %16, %17 : vector<8x128xi32>
      %19 = arith.addi %18, %14 : vector<8x128xi32>
      %c8_i32 = arith.constant 8 : i32
      %20 = vector.broadcast %c8_i32 : i32 to vector<8x128xi32>
      %21 = arith.cmpi slt, %19, %20 : vector<8x128xi32>
      %cst = arith.constant 1.250000e+00 : f32
      %22 = vector.broadcast %cst : f32 to vector<8x128xf32>
      %23 = arith.subf %22, %12 : vector<8x128xf32>
      %cst_9 = arith.constant 0.000000e+00 : f32
      %24 = vector.broadcast %cst_9 : f32 to vector<8x128xf32>
      %25 = arith.maximumf %23, %24 : vector<8x128xf32>
      %cst_10 = arith.constant 7.500000e-01 : f32
      %26 = vector.broadcast %cst_10 : f32 to vector<8x128xf32>
      %27 = arith.subf %26, %12 : vector<8x128xf32>
      %28 = arith.mulf %25, %27 : vector<8x128xf32>
      %cst_11 = arith.constant 8.000000e+01 : f32
      %29 = vector.broadcast %cst_11 : f32 to vector<8x128xf32>
      %30 = arith.mulf %28, %29 : vector<8x128xf32>
      %cst_12 = arith.constant -3.40282347E+38 : f32
      %31 = vector.broadcast %cst_12 : f32 to vector<8x128xf32>
      %32 = arith.select %21, %30, %31 : vector<8x128xi1>, vector<8x128xf32>
      %c0_13 = arith.constant 0 : index
      %c0_14 = arith.constant 0 : index
      %33 = vector.load %arg4[%c0_13, %c0_14] : memref<8x128xf32, #tpu.memory_space<vmem>>, vector<8x128xf32>
      %c0_15 = arith.constant 0 : index
      %c0_16 = arith.constant 0 : index
      %34 = vector.load %arg5[%c0_15, %c0_16] : memref<8x128xf32, #tpu.memory_space<vmem>>, vector<8x128xf32>
      %35 = arith.subf %32, %33 : vector<8x128xf32>
      %36 = math.absf %35 : vector<8x128xf32>
      %cst_17 = arith.constant 0.000000e+00 : f32
      %37 = vector.broadcast %cst_17 : f32 to vector<8x128xf32>
      %38 = arith.subf %37, %36 : vector<8x128xf32>
      %39 = math.exp %38 : vector<8x128xf32>
      %cst_18 = arith.constant 0.000000e+00 : f32
      %40 = vector.broadcast %cst_18 : f32 to vector<8x128xf32>
      %41 = arith.select %21, %39, %40 : vector<8x128xi1>, vector<8x128xf32>
      %cst_19 = arith.constant 0.000000e+00 : f32
      %42 = vector.broadcast %cst_19 : f32 to vector<8x128xf32>
      %43 = arith.cmpf ogt, %35, %42 : vector<8x128xf32>
      %44 = arith.mulf %34, %39 : vector<8x128xf32>
      %cst_20 = arith.constant 1.000000e+00 : f32
      %45 = vector.broadcast %cst_20 : f32 to vector<8x128xf32>
      %46 = arith.addf %44, %45 : vector<8x128xf32>
      %47 = arith.addf %34, %41 : vector<8x128xf32>
      %48 = arith.select %43, %46, %47 : vector<8x128xi1>, vector<8x128xf32>
      %c0_21 = arith.constant 0 : index
      %c0_22 = arith.constant 0 : index
      %49 = vector.load %arg5[%c0_21, %c0_22] : memref<8x128xf32, #tpu.memory_space<vmem>>, vector<8x128xf32>
      tpu.vector_store %arg5[%c0_21, %c0_22], %48 {strides = array<i32>} : memref<8x128xf32, #tpu.memory_space<vmem>>, vector<8x128xf32>,
      %50 = arith.maximumf %33, %32 : vector<8x128xf32>
      %c0_23 = arith.constant 0 : index
      %c0_24 = arith.constant 0 : index
      %51 = vector.load %arg4[%c0_23, %c0_24] : memref<8x128xf32, #tpu.memory_space<vmem>>, vector<8x128xf32>
      tpu.vector_store %arg4[%c0_23, %c0_24], %50 {strides = array<i32>} : memref<8x128xf32, #tpu.memory_space<vmem>>, vector<8x128xf32>,
    } else {
    }
    %c0_i32_3 = arith.constant 0 : i32
    %6 = arith.cmpi eq, %arg0, %c0_i32_3 : i32
    %7 = arith.extui %6 : i1 to i32
    %c0_i32_4 = arith.constant 0 : i32
    %8 = arith.cmpi ne, %7, %c0_i32_4 : i32
    scf.if %8 {
      %c0 = arith.constant 0 : index
      %c0_7 = arith.constant 0 : index
      %12 = vector.load %arg2[%c0, %c0_7] : memref<8x128xf32, #tpu.memory_space<vmem>>, vector<8x128xf32>
      %13 = tpu.iota {dimensions = array<i32: 0>} : vector<8x128xi32>
      %14 = tpu.iota {dimensions = array<i32: 1>} : vector<8x128xi32>
      %c0_i32_8 = arith.constant 0 : i32
      %15 = vector.broadcast %c0_i32_8 : i32 to vector<8x128xi32>
      %16 = arith.addi %15, %13 : vector<8x128xi32>
      %c128_i32 = arith.constant 128 : i32
      %17 = vector.broadcast %c128_i32 : i32 to vector<8x128xi32>
      %18 = arith.muli %16, %17 : vector<8x128xi32>
      %19 = arith.addi %18, %14 : vector<8x128xi32>
      %c16_i32 = arith.constant 16 : i32
      %20 = vector.broadcast %c16_i32 : i32 to vector<8x128xi32>
      %21 = arith.cmpi slt, %19, %20 : vector<8x128xi32>
      %cst = arith.constant 2.500000e-01 : f32
      %22 = vector.broadcast %cst : f32 to vector<8x128xf32>
      %23 = arith.addf %12, %22 : vector<8x128xf32>
      %cst_9 = arith.constant 0.000000e+00 : f32
      %24 = vector.broadcast %cst_9 : f32 to vector<8x128xf32>
      %25 = arith.maximumf %23, %24 : vector<8x128xf32>
      %cst_10 = arith.constant 2.500000e-01 : f32
      %26 = vector.broadcast %cst_10 : f32 to vector<8x128xf32>
      %27 = arith.subf %12, %26 : vector<8x128xf32>
      %28 = arith.mulf %25, %27 : vector<8x128xf32>
      %cst_11 = arith.constant 8.000000e+01 : f32
      %29 = vector.broadcast %cst_11 : f32 to vector<8x128xf32>
      %30 = arith.mulf %28, %29 : vector<8x128xf32>
      %cst_12 = arith.constant -3.40282347E+38 : f32
      %31 = vector.broadcast %cst_12 : f32 to vector<8x128xf32>
      %32 = arith.select %21, %30, %31 : vector<8x128xi1>, vector<8x128xf32>
      %c0_13 = arith.constant 0 : index
      %c0_14 = arith.constant 0 : index
      %33 = vector.load %arg6[%c0_13, %c0_14] : memref<8x128xf32, #tpu.memory_space<vmem>>, vector<8x128xf32>
      %c0_15 = arith.constant 0 : index
      %c0_16 = arith.constant 0 : index
      %34 = vector.load %arg7[%c0_15, %c0_16] : memref<8x128xf32, #tpu.memory_space<vmem>>, vector<8x128xf32>
      %35 = arith.subf %32, %33 : vector<8x128xf32>
      %36 = math.absf %35 : vector<8x128xf32>
      %cst_17 = arith.constant 0.000000e+00 : f32
      %37 = vector.broadcast %cst_17 : f32 to vector<8x128xf32>
      %38 = arith.subf %37, %36 : vector<8x128xf32>
      %39 = math.exp %38 : vector<8x128xf32>
      %cst_18 = arith.constant 0.000000e+00 : f32
      %40 = vector.broadcast %cst_18 : f32 to vector<8x128xf32>
      %41 = arith.select %21, %39, %40 : vector<8x128xi1>, vector<8x128xf32>
      %cst_19 = arith.constant 0.000000e+00 : f32
      %42 = vector.broadcast %cst_19 : f32 to vector<8x128xf32>
      %43 = arith.cmpf ogt, %35, %42 : vector<8x128xf32>
      %44 = arith.mulf %34, %39 : vector<8x128xf32>
      %cst_20 = arith.constant 1.000000e+00 : f32
      %45 = vector.broadcast %cst_20 : f32 to vector<8x128xf32>
      %46 = arith.addf %44, %45 : vector<8x128xf32>
      %47 = arith.addf %34, %41 : vector<8x128xf32>
      %48 = arith.select %43, %46, %47 : vector<8x128xi1>, vector<8x128xf32>
      %c0_21 = arith.constant 0 : index
      %c0_22 = arith.constant 0 : index
      %49 = vector.load %arg7[%c0_21, %c0_22] : memref<8x128xf32, #tpu.memory_space<vmem>>, vector<8x128xf32>
      tpu.vector_store %arg7[%c0_21, %c0_22], %48 {strides = array<i32>} : memref<8x128xf32, #tpu.memory_space<vmem>>, vector<8x128xf32>,
      %50 = arith.maximumf %33, %32 : vector<8x128xf32>
      %c0_23 = arith.constant 0 : index
      %c0_24 = arith.constant 0 : index
      %51 = vector.load %arg6[%c0_23, %c0_24] : memref<8x128xf32, #tpu.memory_space<vmem>>, vector<8x128xf32>
      tpu.vector_store %arg6[%c0_23, %c0_24], %50 {strides = array<i32>} : memref<8x128xf32, #tpu.memory_space<vmem>>, vector<8x128xf32>,
    } else {
    }
    %c0_i32_5 = arith.constant 0 : i32
    %9 = arith.cmpi eq, %arg0, %c0_i32_5 : i32
    %10 = arith.extui %9 : i1 to i32
    %c0_i32_6 = arith.constant 0 : i32
    %11 = arith.cmpi ne, %10, %c0_i32_6 : i32
    scf.if %11 {
      %c0 = arith.constant 0 : index
      %c0_7 = arith.constant 0 : index
      %12 = vector.load %arg4[%c0, %c0_7] : memref<8x128xf32, #tpu.memory_space<vmem>>, vector<8x128xf32>
      %c0_8 = arith.constant 0 : index
      %c0_9 = arith.constant 0 : index
      %13 = vector.load %arg5[%c0_8, %c0_9] : memref<8x128xf32, #tpu.memory_space<vmem>>, vector<8x128xf32>
      %14 = vector.shape_cast %12 : vector<8x128xf32> to vector<1x8x128xf32>
      %cst = arith.constant dense<0xFF800000> : vector<1xf32>
      %15 = vector.multi_reduction <maximumf>, %14, %cst [1, 2] : vector<1x8x128xf32> to vector<1xf32>
      %16 = vector.shape_cast %15 : vector<1xf32> to vector<1x1x1xf32>
      %17 = vector.extract %16[0, 0, 0] : f32 from vector<1x1x1xf32>
      %18 = vector.broadcast %17 : f32 to vector<1x1xf32>
      %19 = vector.broadcast %18 : vector<1x1xf32> to vector<8x128xf32>
      %20 = arith.subf %12, %19 : vector<8x128xf32>
      %21 = math.exp %20 : vector<8x128xf32>
      %22 = arith.mulf %13, %21 : vector<8x128xf32>
      %23 = vector.shape_cast %22 : vector<8x128xf32> to vector<1x8x128xf32>
      %cst_10 = arith.constant dense<0.000000e+00> : vector<1xf32>
      %24 = vector.multi_reduction <add>, %23, %cst_10 [1, 2] : vector<1x8x128xf32> to vector<1xf32>
      %25 = vector.shape_cast %24 : vector<1xf32> to vector<1x1x1xf32>
      %26 = vector.extract %25[0, 0, 0] : f32 from vector<1x1x1xf32>
      %27 = vector.broadcast %26 : f32 to vector<1x1xf32>
      %28 = math.log %27 : vector<1x1xf32>
      %29 = arith.addf %18, %28 : vector<1x1xf32>
      %c0_11 = arith.constant 0 : index
      %c0_12 = arith.constant 0 : index
      %30 = vector.load %arg6[%c0_11, %c0_12] : memref<8x128xf32, #tpu.memory_space<vmem>>, vector<8x128xf32>
      %c0_13 = arith.constant 0 : index
      %c0_14 = arith.constant 0 : index
      %31 = vector.load %arg7[%c0_13, %c0_14] : memref<8x128xf32, #tpu.memory_space<vmem>>, vector<8x128xf32>
      %32 = vector.shape_cast %30 : vector<8x128xf32> to vector<1x8x128xf32>
      %cst_15 = arith.constant dense<0xFF800000> : vector<1xf32>
      %33 = vector.multi_reduction <maximumf>, %32, %cst_15 [1, 2] : vector<1x8x128xf32> to vector<1xf32>
      %34 = vector.shape_cast %33 : vector<1xf32> to vector<1x1x1xf32>
      %35 = vector.extract %34[0, 0, 0] : f32 from vector<1x1x1xf32>
      %36 = vector.broadcast %35 : f32 to vector<1x1xf32>
      %37 = vector.broadcast %36 : vector<1x1xf32> to vector<8x128xf32>
      %38 = arith.subf %30, %37 : vector<8x128xf32>
      %39 = math.exp %38 : vector<8x128xf32>
      %40 = arith.mulf %31, %39 : vector<8x128xf32>
      %41 = vector.shape_cast %40 : vector<8x128xf32> to vector<1x8x128xf32>
      %cst_16 = arith.constant dense<0.000000e+00> : vector<1xf32>
      %42 = vector.multi_reduction <add>, %41, %cst_16 [1, 2] : vector<1x8x128xf32> to vector<1xf32>
      %43 = vector.shape_cast %42 : vector<1xf32> to vector<1x1x1xf32>
      %44 = vector.extract %43[0, 0, 0] : f32 from vector<1x1x1xf32>
      %45 = vector.broadcast %44 : f32 to vector<1x1xf32>
      %46 = math.log %45 : vector<1x1xf32>
      %47 = arith.addf %36, %46 : vector<1x1xf32>
      %48 = arith.addf %29, %47 : vector<1x1xf32>
      %cst_17 = arith.constant 0.000000e+00 : f32
      %49 = vector.broadcast %cst_17 : f32 to vector<1x1xf32>
      %50 = arith.maximumf %48, %49 : vector<1x1xf32>
      %51 = math.absf %48 : vector<1x1xf32>
      %cst_18 = arith.constant 0.000000e+00 : f32
      %52 = vector.broadcast %cst_18 : f32 to vector<1x1xf32>
      %53 = arith.subf %52, %51 : vector<1x1xf32>
      %54 = math.exp %53 : vector<1x1xf32>
      %55 = math.log1p %54 : vector<1x1xf32>
      %56 = arith.addf %50, %55 : vector<1x1xf32>
      %c0_19 = arith.constant 0 : index
      %c0_20 = arith.constant 0 : index
      %57 = vector.load %arg3[%c0_19, %c0_20] : memref<1x1xf32, #tpu.memory_space<vmem>>, vector<1x1xf32>
      tpu.vector_store %arg3[%c0_19, %c0_20], %56 {strides = array<i32>} : memref<1x1xf32, #tpu.memory_space<vmem>>, vector<1x1xf32>,
    } else {
    }
    return
  }
  func.func @transform_0(%arg0: i32) -> (i32, i32) {
    %c0_i32 = arith.constant 0 : i32
    %0 = arith.minsi %arg0, %c0_i32 : i32
    %c0_i32_0 = arith.constant 0 : i32
    %c0_i32_1 = arith.constant 0 : i32
    return %0, %c0_i32_0 : i32, i32
  }
  func.func @transform_1(%arg0: i32) -> (i32, i32) {
    %c0_i32 = arith.constant 0 : i32
    %0 = arith.minsi %arg0, %c0_i32 : i32
    %c0_i32_0 = arith.constant 0 : i32
    %c0_i32_1 = arith.constant 0 : i32
    return %0, %c0_i32_0 : i32, i32
  }
  func.func @transform_2(%arg0: i32) -> (i32, i32) {
    %c0_i32 = arith.constant 0 : i32
    %c0_i32_0 = arith.constant 0 : i32
    %c0_i32_1 = arith.constant 0 : i32
    return %c0_i32, %c0_i32_0 : i32, i32
  }
}

</mosaic_0001>

<bundles_post_ra>
// kernel: tpu_custom_call.1
= control target key start
LH: loop header
LB: loop body
LE: loop exit
PB: predicated region body
PF: predicated region fallthrough
CT: control target
= control target key end

     0   :  { %7 = vsyncpa [#allocation7], 0  ;;  %s349_s0 = inlined_call_operand.hbm [shape: f32[8,128], index: 0, kind: input, shape index: {}]   ;;  %s350_s1 = inlined_call_operand.hbm [shape: f32[8,128], index: 1, kind: input, shape index: {}]   ;;  %s351_s2 = inlined_call_operand.hbm [shape: f32[1,1], index: 2, kind: output, shape index: {}]  }
   0x1   :  { %8 = vsyncpa [#allocation10], 0 }
   0x2   :  { %9 = vsyncpa [#allocation8], 0  ;;  %s292_s9 = smov [#allocation6]   ;;  %s293_s11 = smov [#allocation9]  }
   0x3   :  { %s16_s10 = sshll.u32 %s292_s9, 4  ;;  %s26_s12 = sshll.u32 %s293_s11, 4  ;;  %s17_s10 = int_to_ptr.vmem [resolvable:$true] %s16_s10  ;;  %s27_s12 = int_to_ptr.vmem [resolvable:$true] %s26_s12 }
   0x4   :  { %s220_s15 = scalar_lea.hbm %s349_s0, 128 }
   0x5   :  { %p221_p0 = scmp.ne.s32.totalorder %s349_s0, %s220_s15  ;;  %p224_p1 = scmp.lt.u32.totalorder %s220_s15, %s349_s0 }
   0x7   :  { %p226_p2 = pnand %p224_p1, %p221_p0 }
   0x9   :  { %229 = shalt.err (!%p226_p2)
}
   0xa   :  { %s230_s20 = scalar_lea.vmem %s17_s10, 128  ;;  %p235_p4 = scmp.lt.s32.totalorder %s17_s10, %s17_s10 }
   0xb   :  { %p231_p3 = scmp.ne.s32.totalorder %s17_s10, %s230_s20  ;;  %p236_p5 = scmp.lt.s32.totalorder %s230_s20, %s230_s20 }
   0xd   :  { %p237_p6 = por %p236_p5, %p235_p4 }
   0xf   :  { %p238_p7 = pnand %p237_p6, %p231_p3 }
  0x11   :  { %241 = shalt.err (!%p238_p7)
}
  0x12   :  { %19 = dma.hbm_to_vmem [thread:$0]  %s349_s0, 128, %s17_s10, [#allocation7]  }
  0x13   :  { %s242_s25 = scalar_lea.hbm %s350_s1, 128 }
  0x14   :  { %p243_p8 = scmp.ne.s32.totalorder %s350_s1, %s242_s25  ;;  %p246_p9 = scmp.lt.u32.totalorder %s242_s25, %s350_s1 }
  0x16   :  { %p248_p10 = pnand %p246_p9, %p243_p8 }
  0x18   :  { %251 = shalt.err (!%p248_p10)
}
  0x19   :  { %s252_s30 = scalar_lea.vmem %s27_s12, 128  ;;  %p257_p12 = scmp.lt.s32.totalorder %s27_s12, %s27_s12 }
  0x1a   :  { %p253_p11 = scmp.ne.s32.totalorder %s27_s12, %s252_s30  ;;  %p258_p13 = scmp.lt.s32.totalorder %s252_s30, %s252_s30 }
  0x1c   :  { %p259_p0 = por %p258_p13, %p257_p12 }
  0x1e   :  { %p260_p1 = pnand %p259_p0, %p253_p11 }
  0x20   :  { %263 = shalt.err (!%p260_p1)
}
  0x21   :  { %29 = dma.hbm_to_vmem [thread:$0]  %s350_s1, 128, %s27_s12, [#allocation10]  }
  0x22   :  { %286 = dma.done.wait [#allocation7], 128  }
  0x23   :  { %287 = vsyncadd [#allocation7], 4294967168 }
  0x24   :  { %288 = dma.done.wait [#allocation10], 128  }
  0x25   :  { %289 = vsyncadd [#allocation10], 4294967168  ;;  %v45_v0 = vlaneseq  ;;  %v44_v4 = vld [vmem:[#allocation6] sm:$0xff]  ;;  %v74_v19 = vld [vmem:[#allocation9] sm:$0xff]  ;;  %s294_s7 = smov [#allocation11]   ;;  %vm172_vm5 = vcmask 0  }
  0x26   :  { %v52_v5 = vsub.f32 1.25, %v44_v4  ;;  %v54_v6 = vsub.f32 0.75, %v44_v4  ;;  %v76_v20 = vadd.f32 0.25, %v74_v19  ;;  %v190_v22 = vadd.f32 -0.25, %v74_v19  ;;  %s180_s8 = sshll.u32 %s294_s7, 4  ;;  %s181_s8 = int_to_ptr.vmem [resolvable:$true] %s180_s8 }
  0x27   :  { %v46_v1 = vshrl.u32 %v45_v0, 7  ;;  %v48_v2 = vand.u32 127, %v45_v0  ;;  %s264_s9 = scalar_lea.vmem %s181_s8, 16  ;;  %s268_s10 = scalar_lea.vmem %s181_s8, 32 }
  0x28   :  { %v53_v8 = vmax.f32 %v52_v5, 0.0  ;;  %v77_v21 = vmax.f32 %v76_v20, 0.0  ;;  %p265_p2 = scmp.ne.s32.totalorder %s181_s8, %s264_s9  ;;  %p269_p3 = scmp.lt.s32.totalorder %s181_s8, %s181_s8 }
  0x29   :  { %v49_v3 = vmul.u32 128, %v46_v1  ;;  %p270_p4 = scmp.lt.s32.totalorder %s268_s10, %s264_s9 }
  0x2a   :  { %v55_v9 = vmul.f32 %v54_v6, %v53_v8  ;;  %v79_v23 = vmul.f32 %v190_v22, %v77_v21 }
  0x2b   :  { %v50_v7 = vadd.s32 %v49_v3, %v48_v2  ;;  %p271_p5 = por %p270_p4, %p269_p3 }
  0x2c   :  { %v56_v10 = vmul.f32 80.0, %v55_v9  ;;  %v80_v25 = vmul.f32 80.0, %v79_v23 }
  0x2d   :  { %vm51_vm0 = vcmp.lt.s32.totalorder %v50_v7, 8  ;;  %vm75_vm1 = vcmp.lt.s32.totalorder %v50_v7, 16  ;;  %p272_p6 = pnand %p271_p5, %p265_p2 }
  0x2e   :  { %v57_v11 = vsel %vm51_vm0, %v56_v10, -3.4028235e+38  ;;  %v81_v27 = vsel %vm75_vm1, %v80_v25, -3.4028235e+38 }
  0x2f   :  { %v72_v12 = vmax.f32 %v57_v11, -3.4028235e+38  ;;  %v191_v13 = vadd.f32 3.4028235e+38, %v57_v11  ;;  %v96_v29 = vmax.f32 %v81_v27, -3.4028235e+38 }
  0x30   :  { %v192_v30 = vadd.f32 3.4028235e+38, %v81_v27 }
  0x31   :  { %100 = vmax.xlane.f32.xlu0 %v72_v12  ;;  %v61_v14 = vand.u32 2147483647, %v191_v13  ;;  %vm66_vm2 = vcmp.gt.f32.partialorder %v191_v13, 0.0  ;;  %129 = vmax.xlane.f32.xlu1 %v96_v29 }
  0x32   :  { %v85_v31 = vand.u32 2147483647, %v192_v30  ;;  %vm90_vm3 = vcmp.gt.f32.partialorder %v192_v30, 0.0 }
  0x33   :  { %v62_v15 = vsub.f32 0.0, %v61_v14 }
  0x34   :  { %v86_v32 = vsub.f32 0.0, %v85_v31 }
  0x35   :  { %v63_v16 = vmul.f32 1.442695, %v62_v15 }
  0x36   :  { %v87_v33 = vmul.f32 1.442695, %v86_v32 }
  0x37   :  { %204 = vpow2.f32 %v63_v16 }
  0x38   :  { %206 = vpow2.f32 %v87_v33 }
  0x41   :  { %v205_v17 = vpop.eup %204 }
  0x42   :  { %v65_v18 = vsel %vm51_vm0, %v205_v17, 0.0  ;;  %v67_v24 = vmul.f32 0.0, %v205_v17  ;;  %v207_v34 = vpop.eup %206 }
  0x43   :  { %v89_v35 = vsel %vm75_vm1, %v207_v34, 0.0  ;;  %v91_v48 = vmul.f32 0.0, %v207_v34 }
  0x44   :  { %v68_v26 = vadd.f32 1.0, %v67_v24 }
  0x45   :  { %v92_v49 = vadd.f32 1.0, %v91_v48 }
  0x46   :  { %v70_v28 = vsel %vm66_vm2, %v68_v26, %v65_v18 }
  0x47   :  { %v94_v50 = vsel %vm90_vm3, %v92_v49, %v89_v35 }
  0xbe   :  { %v101_v36 = vpop.xlane.xlu0 %100  ;;  %v130_v51 = vpop.xlane.xlu1 %129 }
  0xbf   :  { %v102_v37 = vrot.slane %v101_v36, 4  ;;  %v131_v52 = vrot.slane %v130_v51, 4 }
  0xc1   :  { %v103_v38 = vmax.f32 %v101_v36, %v102_v37  ;;  %v132_v53 = vmax.f32 %v130_v51, %v131_v52 }
  0xc3   :  { %v104_v39 = vrot.slane %v103_v38, 2  ;;  %v133_v54 = vrot.slane %v132_v53, 2 }
  0xc5   :  { %v105_v40 = vmax.f32 %v103_v38, %v104_v39  ;;  %v134_v58 = vmax.f32 %v132_v53, %v133_v54 }
  0xc7   :  { %v106_v41 = vrot.slane %v105_v40, 1  ;;  %v135_v61 = vrot.slane %v134_v58, 1 }
  0xc9   :  { %v107_v42 = vmax.f32 %v105_v40, %v106_v41  ;;  %v136_v0 = vmax.f32 %v134_v58, %v135_v61 }
  0xcb   :  { %193 = vpush %v107_v42 }
  0xfc   :  { %s334_s1 = spop %193 }
  0xfd   :  { %v109_v43 = vstv %s334_s1 }
  0xfe   :  { %v110_v44 = vsub.f32 %v72_v12, %v109_v43 }
 0x100   :  { %v111_v45 = vmul.f32 1.442695, %v110_v44 }
 0x102   :  { %208 = vpow2.f32 %v111_v45 }
 0x10c   :  { %v209_v46 = vpop.eup %208 }
 0x10d   :  { %v113_v47 = vmul.f32 %v209_v46, %v70_v28 }
 0x10f   :  { %114 = vadd.xlane.f32.xlu0 %v113_v47 }
 0x19c   :  { %v115_v55 = vpop.xlane.xlu0 %114 }
 0x19d   :  { %v116_v56 = vrot.slane %v115_v55, 4 }
 0x19f   :  { %v117_v57 = vadd.f32 %v116_v56, %v115_v55 }
 0x1a1   :  { %v118_v59 = vrot.slane %v117_v57, 2 }
 0x1a3   :  { %v119_v60 = vadd.f32 %v118_v59, %v117_v57 }
 0x1a5   :  { %v120_v62 = vrot.slane %v119_v60, 1 }
 0x1a7   :  { %v121_v63 = vadd.f32 %v120_v62, %v119_v60 }
 0x1a9   :  { %195 = vpush %v121_v63 }
 0x1aa   :  { %197 = vpush %v136_v0 }
 0x1da   :  { %s196_s4 = spop %195 }
 0x1db   :  { %s198_s5 = spop %197  ;;  %v123_v13 = vstv %s196_s4 }
 0x1dc   :  { %v138_v1 = vstv %s198_s5 }
 0x1dd   :  { %v139_v2 = vsub.f32 %v96_v29, %v138_v1 }
 0x1df   :  { %v140_v3 = vmul.f32 1.442695, %v139_v2 }
 0x1e1   :  { %210 = vpow2.f32 %v140_v3 }
 0x1e2   :  { %212 = vlog2.f32 %v123_v13 }
 0x1eb   :  { %v211_v4 = vpop.eup %210 }
 0x1ec   :  { %v142_v5 = vmul.f32 %v211_v4, %v94_v50  ;;  %v213_v15 = vpop.eup %212 }
 0x1ed   :  { %v125_v16 = vmul.f32 0.6931472, %v213_v15 }
 0x1ee   :  { %143 = vadd.xlane.f32.xlu1 %v142_v5 }
 0x1ef   :  { %v126_v19 = vadd.f32 %v125_v16, %v109_v43 }
 0x27b   :  { %v144_v6 = vpop.xlane.xlu1 %143 }
 0x27c   :  { %v145_v7 = vrot.slane %v144_v6, 4 }
 0x27e   :  { %v146_v8 = vadd.f32 %v145_v7, %v144_v6 }
 0x280   :  { %v147_v9 = vrot.slane %v146_v8, 2 }
 0x282   :  { %v148_v10 = vadd.f32 %v147_v9, %v146_v8 }
 0x284   :  { %v149_v11 = vrot.slane %v148_v10, 1 }
 0x286   :  { %v150_v12 = vadd.f32 %v149_v11, %v148_v10 }
 0x288   :  { %199 = vpush %v150_v12 }
 0x2b9   :  { %s200_s6 = spop %199 }
 0x2ba   :  { %v152_v14 = vstv %s200_s6 }
 0x2bb   :  { %214 = vlog2.f32 %v152_v14 }
 0x2c5   :  { %v215_v17 = vpop.eup %214 }
 0x2c6   :  { %v154_v18 = vmul.f32 0.6931472, %v215_v17 }
 0x2c8   :  { %v155_v20 = vadd.f32 %v154_v18, %v138_v1 }
 0x2ca   :  { %v156_v21 = vadd.f32 %v155_v20, %v126_v19 }
 0x2cc   :  { %v158_v22 = vand.u32 2147483647, %v156_v21  ;;  %v157_v33 = vmax.f32 %v156_v21, 0.0 }
 0x2ce   :  { %v159_v23 = vsub.f32 0.0, %v158_v22 }
 0x2d0   :  { %v160_v24 = vmul.f32 1.442695, %v159_v23 }
 0x2d2   :  { %216 = vpow2.f32 %v160_v24 }
 0x2dc   :  { %v217_v25 = vpop.eup %216 }
 0x2dd   :  { %v162_v26 = vadd.f32 1.0, %v217_v25  ;;  %v165_v27 = vmul.f32 -0.5, %v217_v25  ;;  %v168_v29 = vand.u32 2147483647, %v217_v25 }
 0x2df   :  { %218 = vlog2.f32 %v162_v26  ;;  %v166_v28 = vadd.f32 1.0, %v165_v27  ;;  %vm169_vm4 = vcmp.lt.f32.partialorder %v168_v29, 0.0004427343 }
 0x2e1   :  { %v167_v32 = vmul.f32 %v217_v25, %v166_v28 }
 0x2e9   :  { %v219_v30 = vpop.eup %218 }
 0x2ea   :  { %v164_v31 = vmul.f32 0.6931472, %v219_v30 }
 0x2ec   :  { %v170_v34 = vsel %vm169_vm4, %v167_v32, %v164_v31 }
 0x2ed   :  { %v171_v35 = vadd.f32 %v170_v34, %v157_v33 }
 0x2ef   :  { %173 = vst.msk [vmem:[#allocation11] sm:$0x1] %vm172_vm5, %v171_v35 }
 0x2f0   :  { %275 = shalt.err (!%p272_p6)
}
 0x2f1   :  { %s276_s13 = scalar_lea.hbm %s351_s2, 16 }
 0x2f2   :  { %p277_p7 = scmp.ne.s32.totalorder %s351_s2, %s276_s13  ;;  %p280_p8 = scmp.lt.u32.totalorder %s276_s13, %s351_s2 }
 0x2f4   :  { %p282_p9 = pnand %p280_p8, %p277_p7 }
 0x2f6   :  { %285 = shalt.err (!%p282_p9)
}
 0x2f7   :  { %183 = dma.vmem_to_hbm [thread:$0]  %s181_s8, 16, %s351_s2, [#allocation8]  }
 0x2f8   :  { %290 = dma.done.wait [#allocation8], 16  }
 0x2f9   :  { %291 = vsyncadd [#allocation8], 4294967280 }
 0x2fa   :  { %187 = vsyncpa [#allocation7], 1 }
 0x2fb   :  { %188 = vsyncpa [#allocation10], 1 }
 0x2fc   :  { %189 = vsyncpa [#allocation8], 1 }

</bundles_post_ra>
